<compile_context>
chip_gen: v6e
topology: v6e:2x2x1
jax: 0.10.0
libtpu: 0.0.40
codegen_flags: <defaults>
</compile_context>

<pallas_src>
import functools

import jax
import jax.numpy as jnp
import numpy as np
from jax.experimental import pallas as pl
from jax.experimental.pallas import tpu as pltpu


def _round_up(x, m):
    return ((x + m - 1) // m) * m


def _matmul_bias_act_kernel(x_ref, w_ref, b_ref, out_ref, acc_ref, *,
                            has_act, negative_slope):
    """One (tm, tk) x (tk, tn) MXU step of the im2col GEMM.

    BN bias + LeakyReLU are fused into the epilogue on the final K step.
    """
    @pl.when(pl.program_id(2) == 0)
    def _init():
        acc_ref[...] = jnp.zeros_like(acc_ref)

    acc_ref[...] += jnp.dot(x_ref[...], w_ref[...],
                            preferred_element_type=jnp.float32)

    @pl.when(pl.program_id(2) == pl.num_programs(2) - 1)
    def _epilogue():
        y = acc_ref[...] + b_ref[...]                  # (tm, tn) + (1, tn)
        if has_act:
            y = jnp.where(y > 0, y, negative_slope * y)  # LeakyReLU(0.1), f32
        out_ref[...] = y.astype(out_ref.dtype)


def conv_bn_act_block(x_nchw, weight_oihw, bn_gamma, bn_beta, bn_mean, bn_var,
                      *, stride, padding, has_bn=True, has_act=True, eps=1e-5,
                      compute_dtype=jnp.bfloat16):
    N, Cin, H, W = x_nchw.shape
    Cout, Cin_w, KH, KW = weight_oihw.shape
    assert Cin == Cin_w
    Hout = (H + 2 * padding - KH) // stride + 1
    Wout = (W + 2 * padding - KW) // stride + 1

    # ---- Eval-mode BN folding: scale goes into the weights, bias stays f32 ----
    if has_bn:
        scale = bn_gamma.astype(jnp.float32) / jnp.sqrt(
            bn_var.astype(jnp.float32) + eps)
        bias = bn_beta.astype(jnp.float32) - bn_mean.astype(jnp.float32) * scale
    else:
        scale = jnp.ones((Cout,), jnp.float32)
        bias = jnp.zeros((Cout,), jnp.float32)

    w = weight_oihw.astype(jnp.float32) * scale[:, None, None, None]
    # OIHW -> (KH, KW, Cin, Cout) -> (KH*KW*Cin, Cout); matches im2col ordering.
    w2d = jnp.transpose(w, (2, 3, 1, 0)).reshape(KH * KW * Cin, Cout)

    # ---- im2col (wrapper-side glue; strided slices absorb stride > 1) ----
    x = jnp.transpose(x_nchw, (0, 2, 3, 1)).astype(jnp.float32)        # NHWC
    x = jnp.pad(x, ((0, 0), (padding, padding), (padding, padding), (0, 0)))
    taps = []
    for kh in range(KH):
        for kw in range(KW):
            taps.append(jax.lax.slice(
                x,
                (0, kh, kw, 0),
                (N, kh + (Hout - 1) * stride + 1,
                 kw + (Wout - 1) * stride + 1, Cin),
                (1, stride, stride, 1)))                # (N, Hout, Wout, Cin)
    patches = jnp.concatenate(taps, axis=-1)            # (N, Hout, Wout, KH*KW*Cin)

    rows = N * Hout * Wout
    K = KH * KW * Cin
    patches = patches.reshape(rows, K)

    # ---- tile sizes: MXU-friendly contraction, lane-dense (>=128) output ----
    tn = 256 if Cout > 128 else 128
    tk = 128
    for cand in (512, 256):                 # grow K tile when K permits
        if _round_up(K, 128) % cand == 0:
            tk = cand
            break
    tm = min(256, _round_up(rows, 16))

    rows_p = _round_up(rows, tm)
    k_p = _round_up(K, tk)
    cout_p = _round_up(Cout, tn)

    patches = jnp.pad(patches, ((0, rows_p - rows), (0, k_p - K))).astype(compute_dtype)
    w2d = jnp.pad(w2d, ((0, k_p - K), (0, cout_p - Cout))).astype(compute_dtype)
    bias2d = jnp.pad(bias, (0, cout_p - Cout)).reshape(1, cout_p)        # f32

    grid = (rows_p // tm, cout_p // tn, k_p // tk)

    kernel = functools.partial(_matmul_bias_act_kernel,
                               has_act=has_act, negative_slope=0.1)

    out2d = pl.pallas_call(
        kernel,
        out_shape=jax.ShapeDtypeStruct((rows_p, cout_p), jnp.float32),
        grid_spec=pltpu.PrefetchScalarGridSpec(
            num_scalar_prefetch=0,
            grid=grid,
            in_specs=[
                pl.BlockSpec((tm, tk), lambda i, j, k: (i, k)),   # im2col rows
                pl.BlockSpec((tk, tn), lambda i, j, k: (k, j)),   # folded weight
                pl.BlockSpec((1, tn), lambda i, j, k: (0, j)),    # BN bias
            ],
            out_specs=pl.BlockSpec((tm, tn), lambda i, j, k: (i, j)),
            scratch_shapes=[pltpu.VMEM((tm, tn), jnp.float32)],
        ),
        compiler_params=pltpu.CompilerParams(
            dimension_semantics=("parallel", "parallel", "arbitrary")),
    )(patches, w2d, bias2d)

    out = out2d[:rows, :Cout].reshape(N, Hout, Wout, Cout)
    return jnp.transpose(out, (0, 3, 1, 2))             # back to NCHW (PyTorch)


def _reference(x_nchw, weight_oihw, gamma, beta, mean, var, *,
               stride, padding, has_bn=True, has_act=True, eps=1e-5):
    """Pure-JAX f32 reference matching the PyTorch module (eval mode)."""
    y = jax.lax.conv_general_dilated(
        x_nchw.astype(jnp.float32), weight_oihw.astype(jnp.float32),
        window_strides=(stride, stride),
        padding=[(padding, padding), (padding, padding)],
        dimension_numbers=("NCHW", "OIHW", "NCHW"))
    if has_bn:
        scale = gamma / jnp.sqrt(var + eps)
        bias = beta - mean * scale
        y = y * scale[None, :, None, None] + bias[None, :, None, None]
    if has_act:
        y = jnp.where(y > 0, y, 0.1 * y)
    return y


if __name__ == "__main__":
    # ConvBnActBlock(inplanes=4, planes=8, kernel_size=3, stride=1, padding=1)
    N, Cin, H, W = 2, 4, 16, 16
    Cout, KH, KW = 8, 3, 3

    key = jax.random.PRNGKey(0)
    kx, kw, kg, kb, km, kv = jax.random.split(key, 6)

    x = jax.random.normal(kx, (N, Cin, H, W), dtype=jnp.float32)
    weight = jax.random.normal(kw, (Cout, Cin, KH, KW), dtype=jnp.float32) * 0.1
    gamma = jax.random.uniform(kg, (Cout,), jnp.float32, 0.5, 1.5)
    beta = jax.random.normal(kb, (Cout,), jnp.float32) * 0.1
    running_mean = jax.random.normal(km, (Cout,), jnp.float32) * 0.1
    running_var = jax.random.uniform(kv, (Cout,), jnp.float32, 0.5, 1.5)

    # stride=1 block
    out = conv_bn_act_block(x, weight, gamma, beta, running_mean, running_var,
                            stride=1, padding=1, has_bn=True, has_act=True)
    out = jax.block_until_ready(out)
    ref = _reference(x, weight, gamma, beta, running_mean, running_var,
                     stride=1, padding=1, has_bn=True, has_act=True)
    assert out.shape == (N, Cout, H, W), out.shape
    # bf16 matmul inputs -> tolerance appropriate for bf16 rounding.
    np.testing.assert_allclose(np.asarray(out), np.asarray(ref),
                               rtol=5e-2, atol=5e-2)

    # stride=2 downsample block (as used in the YOLOv4 backbone)
    out2 = conv_bn_act_block(x, weight, gamma, beta, running_mean, running_var,
                             stride=2, padding=1, has_bn=True, has_act=True)
    out2 = jax.block_until_ready(out2)
    ref2 = _reference(x, weight, gamma, beta, running_mean, running_var,
                      stride=2, padding=1, has_bn=True, has_act=True)
    assert out2.shape == (N, Cout, H // 2, W // 2), out2.shape
    np.testing.assert_allclose(np.asarray(out2), np.asarray(ref2),
                               rtol=5e-2, atol=5e-2)

    print("KERNEL_OK")
</pallas_src>

<mosaic_0001>
module attributes {stable_mosaic.version = 11 : i64} {
  func.func @_matmul_bias_act_kernel(%arg0: i32, %arg1: i32, %arg2: i32, %arg3: memref<256x128xbf16, #tpu.memory_space<vmem>>, %arg4: memref<128x128xbf16, #tpu.memory_space<vmem>>, %arg5: memref<1x128xf32, #tpu.memory_space<vmem>>, %arg6: memref<256x128xf32, #tpu.memory_space<vmem>>, %arg7: memref<256x128xf32, #tpu.memory_space<vmem>>) attributes {dimension_semantics = [#tpu.dimension_semantics<parallel>, #tpu.dimension_semantics<parallel>, #tpu.dimension_semantics<arbitrary>], iteration_bounds = array<i64: 2, 1, 1>, scalar_prefetch = 0 : i64, scratch_operands = 1 : i64, tpu.core_type = #tpu.core_type<tc>, window_params = [{transform_indices = @transform_0, window_bounds = array<i64: 256, 128>}, {transform_indices = @transform_1, window_bounds = array<i64: 128, 128>}, {transform_indices = @transform_2, window_bounds = array<i64: 1, 128>}, {transform_indices = @transform_3, window_bounds = array<i64: 256, 128>}]} {
    %c0_i32 = arith.constant 0 : i32
    %0 = arith.cmpi eq, %arg2, %c0_i32 : i32
    %1 = arith.extui %0 : i1 to i32
    %c0_i32_0 = arith.constant 0 : i32
    %2 = arith.cmpi ne, %1, %c0_i32_0 : i32
    scf.if %2 {
      %cst_10 = arith.constant 0.000000e+00 : f32
      %12 = vector.broadcast %cst_10 : f32 to vector<256x128xf32>
      %c0_11 = arith.constant 0 : index
      %c0_12 = arith.constant 0 : index
      %13 = vector.load %arg7[%c0_11, %c0_12] : memref<256x128xf32, #tpu.memory_space<vmem>>, vector<256x128xf32>
      tpu.vector_store %arg7[%c0_11, %c0_12], %12 {strides = array<i32>} : memref<256x128xf32, #tpu.memory_space<vmem>>, vector<256x128xf32>,
    } else {
    }
    %c0 = arith.constant 0 : index
    %c0_1 = arith.constant 0 : index
    %3 = vector.load %arg7[%c0, %c0_1] : memref<256x128xf32, #tpu.memory_space<vmem>>, vector<256x128xf32>
    %c0_2 = arith.constant 0 : index
    %c0_3 = arith.constant 0 : index
    %4 = vector.load %arg3[%c0_2, %c0_3] : memref<256x128xbf16, #tpu.memory_space<vmem>>, vector<256x128xbf16>
    %c0_4 = arith.constant 0 : index
    %c0_5 = arith.constant 0 : index
    %5 = vector.load %arg4[%c0_4, %c0_5] : memref<128x128xbf16, #tpu.memory_space<vmem>>, vector<128x128xbf16>
    %cst = arith.constant dense<0.000000e+00> : vector<256x128xf32>
    %6 = tpu.matmul %4, %5, %cst {dimension_numbers = #tpu.dot_dimension_numbers<[1], [0], [0], [1], [0, 0, 1, 1], [], []>} : vector<256x128xbf16>, vector<128x128xbf16>, vector<256x128xf32> -> vector<256x128xf32>
    %7 = arith.addf %3, %6 : vector<256x128xf32>
    %c0_6 = arith.constant 0 : index
    %c0_7 = arith.constant 0 : index
    %8 = vector.load %arg7[%c0_6, %c0_7] : memref<256x128xf32, #tpu.memory_space<vmem>>, vector<256x128xf32>
    tpu.vector_store %arg7[%c0_6, %c0_7], %7 {strides = array<i32>} : memref<256x128xf32, #tpu.memory_space<vmem>>, vector<256x128xf32>,
    %c0_i32_8 = arith.constant 0 : i32
    %9 = arith.cmpi eq, %arg2, %c0_i32_8 : i32
    %10 = arith.extui %9 : i1 to i32
    %c0_i32_9 = arith.constant 0 : i32
    %11 = arith.cmpi ne, %10, %c0_i32_9 : i32
    scf.if %11 {
      %c0_10 = arith.constant 0 : index
      %c0_11 = arith.constant 0 : index
      %12 = vector.load %arg7[%c0_10, %c0_11] : memref<256x128xf32, #tpu.memory_space<vmem>>, vector<256x128xf32>
      %c0_12 = arith.constant 0 : index
      %c0_13 = arith.constant 0 : index
      %13 = vector.load %arg5[%c0_12, %c0_13] : memref<1x128xf32, #tpu.memory_space<vmem>>, vector<1x128xf32>
      %14 = vector.broadcast %13 : vector<1x128xf32> to vector<256x128xf32>
      %15 = arith.addf %12, %14 : vector<256x128xf32>
      %cst_14 = arith.constant 0.000000e+00 : f32
      %16 = vector.broadcast %cst_14 : f32 to vector<256x128xf32>
      %17 = arith.cmpf ogt, %15, %16 : vector<256x128xf32>
      %cst_15 = arith.constant 1.000000e-01 : f32
      %18 = vector.broadcast %cst_15 : f32 to vector<256x128xf32>
      %19 = arith.mulf %18, %15 : vector<256x128xf32>
      %20 = arith.select %17, %15, %19 : vector<256x128xi1>, vector<256x128xf32>
      %c0_16 = arith.constant 0 : index
      %c0_17 = arith.constant 0 : index
      %21 = vector.load %arg6[%c0_16, %c0_17] : memref<256x128xf32, #tpu.memory_space<vmem>>, vector<256x128xf32>
      tpu.vector_store %arg6[%c0_16, %c0_17], %20 {strides = array<i32>} : memref<256x128xf32, #tpu.memory_space<vmem>>, vector<256x128xf32>,
    } else {
    }
    return
  }
  func.func @transform_0(%arg0: i32, %arg1: i32, %arg2: i32) -> (i32, i32) {
    %c0_i32 = arith.constant 0 : i32
    return %arg0, %arg2 : i32, i32
  }
  func.func @transform_1(%arg0: i32, %arg1: i32, %arg2: i32) -> (i32, i32) {
    %c0_i32 = arith.constant 0 : i32
    return %arg2, %arg1 : i32, i32
  }
  func.func @transform_2(%arg0: i32, %arg1: i32, %arg2: i32) -> (i32, i32) {
    %c0_i32 = arith.constant 0 : i32
    %c0_i32_0 = arith.constant 0 : i32
    return %c0_i32, %arg1 : i32, i32
  }
  func.func @transform_3(%arg0: i32, %arg1: i32, %arg2: i32) -> (i32, i32) {
    %c0_i32 = arith.constant 0 : i32
    return %arg0, %arg1 : i32, i32
  }
}

</mosaic_0001>

<bundles_post_ra>
// kernel: tpu_custom_call.1
= control target key start
LH: loop header
LB: loop body
LE: loop exit
PB: predicated region body
PF: predicated region fallthrough
CT: control target
= control target key end

     0   :  { %8 = vsyncpa [#allocation4], 0  ;;  %s1752_s0 = inlined_call_operand.hbm [shape: bf16[512,128], index: 0, kind: input, shape index: {}]   ;;  %s1753_s1 = inlined_call_operand.hbm [shape: bf16[128,128], index: 1, kind: input, shape index: {}]   ;;  %s1754_s2 = inlined_call_operand.vmem [shape: f32[1,128], index: 2, kind: input, shape index: {}]   ;;  %s1755_s3 = inlined_call_operand.hbm [shape: f32[512,128], index: 3, kind: output, shape index: {}]  }
   0x1   :  { %10 = vsyncpa [#allocation4 + $0x1], 0 }
   0x2   :  { %11 = vsyncpa [#allocation7], 0 }
   0x3   :  { %12 = vsyncpa [#allocation5], 0 }
   0x4   :  { %14 = vsyncpa [#allocation5 + $0x1], 0  ;;  %s1474_s12 = smov 0   ;;  %s1476_s13 = smov 0  }
   0x5   :  { %s1478_s14 = smov 0   ;;  %s1480_s15 = smov 0  }
   0x6   :  { %s1482_s16 = smov 0   ;;  %s1484_s17 = smov 0  }
   0x7 LB: > { %s1073_s18 = sadd.s32 4294967295, %s1445_s17   ;;  %s1074_s19 = sadd.s32 4294967294, %s1445_s17   ;;  %s1445_s17 = sphi %s1484_s17, %s20_s17   ;;  %s1441_s16 = sphi %s1482_s16, %s1777_s16   ;;  %s1437_s15 = sphi %s1480_s15, %s1776_s15   ;;  %s1433_s14 = sphi %s1478_s14, %s1775_s14   ;;  %s1429_s13 = sphi %s1476_s13, %s1774_s13   ;;  %s1425_s12 = sphi %s1474_s12, %s1773_s12  }
   0x8   : > { %p61_p0 = scmp.ne.s32.totalorder %s1429_s13, %s1425_s12  ;;  %p1508_p1 = scmp.eq.s32.totalorder %s1073_s18, 0 }
   0x9   : > { %p1512_p2 = scmp.eq.s32.totalorder %s1073_s18, 1  ;;  %p147_p3 = scmp.eq.s32.totalorder %s1074_s19, 1 }
   0xa   : > { %p1518_p4 = por %p1508_p1, %p61_p0  ;;  %p1075_p5 = scmp.ge.s32.totalorder %s1445_s17, 1 }
   0xb   : > { %p1523_p6 = por %p147_p3, %p61_p0  ;;  %p154_p7 = scmp.lt.s32.totalorder %s1445_s17, 3 }
   0xc   : > { %s1761_s22 = scalar_select %p1518_p4, 1, 0 }
   0xd   : > { %s1762_s23 = scalar_select %p1523_p6, 1, 0 }
   0xe   : > { %p1528_p8 = pnand %p1075_p5, %p154_p7  ;;  %s1447_s25 = smov [#allocation6]  }
   0xf   : > { %s170_s26 = sshll.u32 %s1447_s25, 4  ;;  %s39_s28 = sadd.s32 1, %s1441_s16  ;;  %s171_s26 = int_to_ptr.vmem [resolvable:$true] %s170_s26 }
  0x10   : > { %p1214_p9 = pneg %p1528_p8  ;;  %s1318_s29 = scalar_lea.vmem %s171_s26, 1024 }
  0x11   : > { %p1319_p13 = scmp.ne.s32.totalorder %s171_s26, %s1318_s29  ;;  %p1326_p5 = scmp.lt.s32.totalorder %s171_s26, %s171_s26 }
  0x12   : > { %p1537_p11 = pnand %p1214_p9, %p1508_p1  ;;  %p1327_p7 = scmp.lt.s32.totalorder %s1318_s29, %s1318_s29 }
  0x14   : > { %p1309_p12 = pneg %p1537_p11  ;;  %p1328_p6 = por %p1327_p7, %p1326_p5 }
  0x16   : > { %p1321_p0 = pnand %p1319_p13, %p1309_p12 }
  0x18   : > { %p1322_p3 = pneg %p1321_p0 }
  0x1a   : > { %p1329_p4 = pnand %p1328_p6, %p1322_p3 }
  0x1c   : > { %1332 = shalt.err (!%p1329_p4)
}
  0x1d   : > { %s1757_s30 = smov 64   ;;  %s1758_s4 = smov 4  }
  0x1e   : > { %1217 = dma.hbm_to_vmem [thread:$0]  (!%p1537_p11), %s1753_s1, 1024, %s171_s26, [#allocation7], %s1757_s30, %s1757_s30, %s1758_s4  }
  0x1f   : > { %p41_p4 = scmp.ge.s32.totalorder %s39_s28, 2  ;;  %s48_s7 = sadd.s32 1, %s1433_s14 }
  0x20   : > { %p55_p6 = scmp.ne.s32.totalorder %s1433_s14, %s1429_s13  ;;  %p56_p9 = scmp.eq.s32.totalorder %s1445_s17, 0 }
  0x21   : > { %s1779_s28 = smov (%p41_p4, %s39_s28), 0  ;;  %p1227_p0 = scmp.lt.s32.totalorder %s1445_s17, 2 }
  0x22   : > { %p1558_p12 = por %p56_p9, %p55_p6  ;;  %p1564_p13 = por %p1512_p2, %p55_p6 }
  0x23   : > { %s43_s10 = ssub.s32 %s1441_s16, %s1779_s28  ;;  %s190_s11 = sand.u32 1, %s1433_s14  }
  0x24   : > { %p46_p11 = scmp.eq.s32.totalorder %s43_s10, 0  ;;  %s1079_s18 = sshll.u32 %s190_s11, 7 }
  0x25   : > { %s1116_s25 = sshll.u32 %s1441_s16, 11  ;;  %s194_s5 = scalar_lea.vmem [#allocation3], %s1079_s18 }
  0x26   : > { %s1573_s19 = scalar_select %p46_p11, %s1433_s14, %s48_s7  }
  0x27   : > { %s201_s29 = scalar_lea.hbm %s1752_s0, %s1116_s25  ;;  %s202_s6 = sshll.u32 %s194_s5, 4  ;;  %s203_s6 = int_to_ptr.vmem [resolvable:$true] %s202_s6 }
  0x28   : > { %p1581_p2 = pnand %p1227_p0, %p1558_p12  ;;  %s191_s30 = scalar_lea.sflag [#allocation4], %s190_s11 }
  0x29   : > { %s1346_s10 = scalar_lea.vmem %s203_s6, 2048  ;;  %s1450_s7 = smov [#allocation3]  }
  0x2a   : > { %p1335_p3 = pneg %p1581_p2  ;;  %p1347_p5 = scmp.ne.s32.totalorder %s203_s6, %s1346_s10 }
  0x2b   : > { %s1351_s4 = sshll.u32 %s1450_s7, 4  ;;  %s1352_s4 = int_to_ptr.vmem [resolvable:$false] %s1351_s4 }
  0x2c   : > { %p1349_p7 = pnand %p1347_p5, %p1335_p3  ;;  %s1353_s25 = scalar_lea.vmem %s1352_s4, 4096 }
  0x2d   : > { %p1354_p6 = scmp.lt.s32.totalorder %s203_s6, %s1352_s4  ;;  %p1355_p9 = scmp.lt.s32.totalorder %s1353_s25, %s1346_s10 }
  0x2e   : > { %p1350_p4 = pneg %p1349_p7 }
  0x2f   : > { %p1356_p11 = por %p1355_p9, %p1354_p6 }
  0x31   : > { %p1357_p10 = pnand %p1356_p11, %p1350_p4 }
  0x33   : > { %1360 = shalt.err (!%p1357_p10)
}
  0x34   : > { %s1768_s8 = smov 4   ;;  %s1769_s18 = smov 64  }
  0x35   : > { %1221 = dma.hbm_to_vmem [thread:$0]  (!%p1581_p2), %s201_s29, 2048, %s203_s6, %s191_s30, %s1769_s18, %s1769_s18, %s1768_s8  }
  0x36   : > { %214 = sbr.rel (%p1528_p8) target bundleno = 338 (0x152), region = 32  ;;  %s1595_s11 = sand.u32 (!%p1528_p8), 1, %s1429_s13  }
  0x37   : > { %s1083_s4 = sshll.u32 (!%p1528_p8), %s1595_s11, 7  ;;  %s217_s26 = scalar_lea.sflag (!%p1528_p8), [#allocation4], %s1595_s11 }
  0x38   : > { %s1599_s27 = scalar_lea.vmem (!%p1528_p8), [#allocation3], %s1083_s4  ;;  %p1770_p10 = scmp.ne.s32.totalorder (!%p1528_p8), %s1761_s22, 0 }
  0x3b   : > { %1412 = dma.done.wait (%p1770_p10), %s217_s26, 2048  }
  0x3c   : > { %1414 = vsyncadd (%p1770_p10), %s217_s26, 4294965248 }
  0x3d   : > { %1416 = dma.done.wait (%p1508_p1), [#allocation7], 1024  }
  0x3e   : > { %1418 = vsyncadd (%p1508_p1), [#allocation7], 4294966272  ;;  %v1283_v0 = vld [vmem:[#allocation6 + $0x38] sm:$0xff]   ;;  %v1284_v1 = vld [vmem:[#allocation6 + $0x30] sm:$0xff]   ;;  %s1085_s24 = sshll.u32 %s1595_s11, 8  ;;  %s1117_s29 = sshll.u32 %s1437_s15, 12 }
  0x3f   : > { %1142 = vmatprep.subr.bf16.mxu0 %v1283_v0  ;;  %1190 = vmatprep.subr.bf16.mxu1 %v1283_v0  ;;  %v1285_v2 = vld [vmem:[#allocation6 + $0x28] sm:$0xff]   ;;  %v1286_v3 = vld [vmem:[#allocation6 + $0x20] sm:$0xff]   ;;  %v1287_v6 = vld [vmem:[#allocation6 + $0x18] sm:$0xff]   ;;  %s1637_s30 = scalar_lea.vmem [#allocation8], %s1085_s24  ;;  %s1700_s21 = scalar_lea.hbm %s1755_s3, %s1117_s29 }
  0x40   : > { %1143 = vmatpush3.bf16.msra.mxu0 %v1283_v0  ;;  %1198 = vmatpush3.bf16.msra.mxu1 %v1283_v0  ;;  %v1291_v4 = vld [vmem:[%s1599_s27] sm:$0xff]   ;;  %v1288_v7 = vld [vmem:[#allocation6 + $0x10] sm:$0xff]   ;;  %v1289_v8 = vld [vmem:[#allocation6 + $0x8] sm:$0xff]   ;;  %s959_s5 = sshll.u32 %s1637_s30, 4  ;;  %s945_s10 = scalar_lea.sflag [#allocation5], %s1595_s11  ;;  %s1702_s5 = int_to_ptr.vmem [resolvable:$true] %s959_s5 }
  0x41   : > { %1144 = vmatprep.subr.bf16.mxu0 %v1284_v1  ;;  %1191 = vmatprep.subr.bf16.mxu1 %v1284_v1  ;;  %v1292_v5 = vld [vmem:[%s1599_s27 + $0x40] sm:$0xff]   ;;  %v1293_v10 = vld [vmem:[%s1599_s27 + $0x8] sm:$0xff]   ;;  %v1295_v12 = vld [vmem:[%s1599_s27 + $0x10] sm:$0xff]   ;;  %s1361_s7 = scalar_lea.vmem %s1702_s5, 4096  ;;  %s1451_s25 = smov [#allocation8]  }
  0x42   : > { %1158 = vmatprep.mubr.bf16.mxu0 %v1291_v4  ;;  %1174 = vmatprep.mubr.bf16.mxu1 %v1292_v5  ;;  %v1290_v9 = vld [vmem:[#allocation6] sm:$0xff]   ;;  %v1294_v11 = vld [vmem:[%s1599_s27 + $0x48] sm:$0xff]   ;;  %v1296_v13 = vld [vmem:[%s1599_s27 + $0x50] sm:$0xff]   ;;  %p1362_p1 = scmp.ne.s32.totalorder %s1702_s5, %s1361_s7  ;;  %s1365_s8 = sshll.u32 %s1451_s25, 4  ;;  %s1366_s8 = int_to_ptr.vmem [resolvable:$false] %s1365_s8 }
  0x43   : > { %v1297_v14 = vld [vmem:[%s1599_s27 + $0x18] sm:$0xff]   ;;  %v1299_v16 = vld [vmem:[%s1599_s27 + $0x20] sm:$0xff]   ;;  %v1301_v18 = vld [vmem:[%s1599_s27 + $0x28] sm:$0xff]   ;;  %s1367_s18 = scalar_lea.vmem %s1366_s8, 8192  ;;  %p1368_p0 = scmp.lt.s32.totalorder %s1702_s5, %s1366_s8 }
  0x44   : > { %1145 = vmatpush3.bf16.msra.mxu0 %v1284_v1  ;;  %1199 = vmatpush3.bf16.msra.mxu1 %v1284_v1  ;;  %v1298_v15 = vld [vmem:[%s1599_s27 + $0x58] sm:$0xff]   ;;  %v1300_v17 = vld [vmem:[%s1599_s27 + $0x60] sm:$0xff]   ;;  %v1302_v19 = vld [vmem:[%s1599_s27 + $0x68] sm:$0xff]   ;;  %p1363_p8 = pnand %p1362_p1, %p1564_p13  ;;  %p1369_p2 = scmp.lt.s32.totalorder %s1367_s18, %s1361_s7 }
  0x45   : > { %1146 = vmatprep.subr.bf16.mxu0 %v1285_v2  ;;  %1192 = vmatprep.subr.bf16.mxu1 %v1285_v2  ;;  %v1303_v20 = vld [vmem:[%s1599_s27 + $0x30] sm:$0xff]   ;;  %v1305_v22 = vld [vmem:[%s1599_s27 + $0x38] sm:$0xff]   ;;  %v1628_v24 = vld [vmem:[%s1754_s2] ss:$0 sm:$0xff] }
  0x46   : > { %v1304_v21 = vld [vmem:[%s1599_s27 + $0x70] sm:$0xff]   ;;  %v1306_v23 = vld [vmem:[%s1599_s27 + $0x78] sm:$0xff]   ;;  %p1364_p12 = pneg %p1363_p8  ;;  %p1370_p3 = por %p1369_p2, %p1368_p0 }
  0x48   : > { %1147 = vmatpush3.bf16.msra.mxu0 %v1285_v2  ;;  %1200 = vmatpush3.bf16.msra.mxu1 %v1285_v2  ;;  %p1371_p5 = pnand %p1370_p3, %p1364_p12 }
  0x49   : > { %1148 = vmatprep.subr.bf16.mxu0 %v1286_v3  ;;  %1193 = vmatprep.subr.bf16.mxu1 %v1286_v3 }
  0x4c   : > { %1149 = vmatpush3.bf16.msra.mxu0 %v1286_v3  ;;  %1201 = vmatpush3.bf16.msra.mxu1 %v1286_v3 }
  0x4d   : > { %1150 = vmatprep.subr.bf16.mxu0 %v1287_v6  ;;  %1194 = vmatprep.subr.bf16.mxu1 %v1287_v6 }
  0x50   : > { %1151 = vmatpush3.bf16.msra.mxu0 %v1287_v6  ;;  %1202 = vmatpush3.bf16.msra.mxu1 %v1287_v6 }
  0x51   : > { %1152 = vmatprep.subr.bf16.mxu0 %v1288_v7  ;;  %1195 = vmatprep.subr.bf16.mxu1 %v1288_v7 }
  0x54   : > { %1153 = vmatpush3.bf16.msra.mxu0 %v1288_v7  ;;  %1203 = vmatpush3.bf16.msra.mxu1 %v1288_v7 }
  0x55   : > { %1154 = vmatprep.subr.bf16.mxu0 %v1289_v8  ;;  %1196 = vmatprep.subr.bf16.mxu1 %v1289_v8 }
  0x58   : > { %1155 = vmatpush3.bf16.msra.mxu0 %v1289_v8  ;;  %1204 = vmatpush3.bf16.msra.mxu1 %v1289_v8 }
  0x59   : > { %1156 = vmatprep.subr.bf16.mxu0 %v1290_v9  ;;  %1197 = vmatprep.subr.bf16.mxu1 %v1290_v9 }
  0x5c   : > { %1157 = vmatpush3.bf16.msra.mxu0 %v1290_v9  ;;  %1205 = vmatpush3.bf16.msra.mxu1 %v1290_v9 }
  0x5f   : > { %1159 = vmatmul.mubr.bf16.vlgmr.msra.gmra.mxu0 %v1293_v10  ;;  %1175 = vmatmul.mubr.bf16.vlgmr.msra.gmra.mxu1 %v1294_v11 }
  0x60   : > { %1162 = vmatprep.mubr.bf16.mxu0 %v1295_v12  ;;  %1178 = vmatprep.mubr.bf16.mxu1 %v1296_v13 }
  0x67   : > { %1163 = vmatmul.mubr.bf16.gmra.mxu0 %v1297_v14  ;;  %1179 = vmatmul.mubr.bf16.gmra.mxu1 %v1298_v15 }
  0x68   : > { %1166 = vmatprep.mubr.bf16.mxu0 %v1299_v16  ;;  %1182 = vmatprep.mubr.bf16.mxu1 %v1300_v17 }
  0x6f   : > { %1167 = vmatmul.mubr.bf16.gmra.mxu0 %v1301_v18  ;;  %1183 = vmatmul.mubr.bf16.gmra.mxu1 %v1302_v19 }
  0x70   : > { %1170 = vmatprep.mubr.bf16.mxu0 %v1303_v20  ;;  %1186 = vmatprep.mubr.bf16.mxu1 %v1304_v21 }
  0x77   : > { %1171 = vmatmul.mubr.bf16.gmra.mxu0 %v1305_v22  ;;  %1187 = vmatmul.mubr.bf16.gmra.mxu1 %v1306_v23 }
 0x11f   : > { %v1160_v25 = vpop.f32.mrf.mxu0  ;;  %v1176_v26 = vpop.f32.mrf.mxu1 }
 0x120   : > { %v786_v27 = vadd.f32 %v1160_v25, %v1628_v24  ;;  %v802_v28 = vadd.f32 %v1176_v26, %v1628_v24 }
 0x121   : > { %v551_v29 = vpop.f32.mrf.mxu0  ;;  %v615_v30 = vpop.f32.mrf.mxu1 }
 0x122   : > { %vm818_vm0 = vcmp.gt.f32.partialorder %v786_v27, 0.0  ;;  %v850_v31 = vmul.f32 0.1, %v786_v27  ;;  %vm834_vm1 = vcmp.gt.f32.partialorder %v802_v28, 0.0  ;;  %v866_v32 = vmul.f32 0.1, %v802_v28 }
 0x123   : > { %v784_v33 = vadd.f32 %v1628_v24, %v551_v29  ;;  %v800_v34 = vadd.f32 %v1628_v24, %v615_v30  ;;  %v1161_v35 = vpop.f32.mrf.mxu0  ;;  %v1177_v36 = vpop.f32.mrf.mxu1 }
 0x124   : > { %v882_v37 = vsel %vm818_vm0, %v786_v27, %v850_v31  ;;  %v898_v38 = vsel %vm834_vm1, %v802_v28, %v866_v32  ;;  %v787_v39 = vadd.f32 %v1161_v35, %v1628_v24  ;;  %v803_v40 = vadd.f32 %v1177_v36, %v1628_v24 }
 0x125   : > { %914 = vst [vmem:[%s1637_s30 + $0x10] sm:$0xff] %v882_v37  ;;  %930 = vst [vmem:[%s1637_s30 + $0x90] sm:$0xff] %v898_v38  ;;  %vm816_vm2 = vcmp.gt.f32.partialorder %v784_v33, 0.0  ;;  %v848_v41 = vmul.f32 0.1, %v784_v33  ;;  %vm832_vm3 = vcmp.gt.f32.partialorder %v800_v34, 0.0  ;;  %v554_v43 = vpop.f32.mrf.mxu0  ;;  %v618_v44 = vpop.f32.mrf.mxu1 }
 0x126   : > { %v864_v42 = vmul.f32 0.1, %v800_v34  ;;  %vm819_vm4 = vcmp.gt.f32.partialorder %v787_v39, 0.0  ;;  %v851_v45 = vmul.f32 0.1, %v787_v39  ;;  %vm835_vm5 = vcmp.gt.f32.partialorder %v803_v40, 0.0 }
 0x127   : > { %v867_v46 = vmul.f32 0.1, %v803_v40  ;;  %v880_v47 = vsel %vm816_vm2, %v784_v33, %v848_v41  ;;  %v785_v49 = vadd.f32 %v1628_v24, %v554_v43  ;;  %v801_v50 = vadd.f32 %v1628_v24, %v618_v44  ;;  %v1164_v51 = vpop.f32.mrf.mxu0  ;;  %v1180_v52 = vpop.f32.mrf.mxu1 }
 0x128   : > { %v896_v48 = vsel %vm832_vm3, %v800_v34, %v864_v42  ;;  %912 = vst [vmem:[%s1637_s30] sm:$0xff] %v880_v47  ;;  %v883_v53 = vsel %vm819_vm4, %v787_v39, %v851_v45  ;;  %v790_v55 = vadd.f32 %v1164_v51, %v1628_v24  ;;  %v806_v56 = vadd.f32 %v1180_v52, %v1628_v24 }
 0x129   : > { %928 = vst [vmem:[%s1637_s30 + $0x80] sm:$0xff] %v896_v48  ;;  %v899_v54 = vsel %vm835_vm5, %v803_v40, %v867_v46  ;;  %915 = vst [vmem:[%s1637_s30 + $0x18] sm:$0xff] %v883_v53  ;;  %vm817_vm6 = vcmp.gt.f32.partialorder %v785_v49, 0.0  ;;  %v849_v57 = vmul.f32 0.1, %v785_v49  ;;  %vm833_vm7 = vcmp.gt.f32.partialorder %v801_v50, 0.0  ;;  %v567_v59 = vpop.f32.mrf.mxu0  ;;  %v631_v60 = vpop.f32.mrf.mxu1 }
 0x12a   : > { %931 = vst [vmem:[%s1637_s30 + $0x98] sm:$0xff] %v899_v54  ;;  %v865_v58 = vmul.f32 0.1, %v801_v50  ;;  %vm822_vm8 = vcmp.gt.f32.partialorder %v790_v55, 0.0  ;;  %v854_v61 = vmul.f32 0.1, %v790_v55  ;;  %v788_v1 = vadd.f32 %v1628_v24, %v567_v59 }
 0x12b   : > { %vm838_vm9 = vcmp.gt.f32.partialorder %v806_v56, 0.0  ;;  %v870_v62 = vmul.f32 0.1, %v806_v56  ;;  %v881_v63 = vsel %vm817_vm6, %v785_v49, %v849_v57  ;;  %v804_v2 = vadd.f32 %v1628_v24, %v631_v60  ;;  %v1165_v3 = vpop.f32.mrf.mxu0  ;;  %v1181_v4 = vpop.f32.mrf.mxu1 }
 0x12c   : > { %v897_v0 = vsel %vm833_vm7, %v801_v50, %v865_v58  ;;  %913 = vst [vmem:[%s1637_s30 + $0x8] sm:$0xff] %v881_v63  ;;  %v886_v5 = vsel %vm822_vm8, %v790_v55, %v854_v61  ;;  %v791_v7 = vadd.f32 %v1165_v3, %v1628_v24  ;;  %v807_v8 = vadd.f32 %v1181_v4, %v1628_v24 }
 0x12d   : > { %929 = vst [vmem:[%s1637_s30 + $0x88] sm:$0xff] %v897_v0  ;;  %v902_v6 = vsel %vm838_vm9, %v806_v56, %v870_v62  ;;  %918 = vst [vmem:[%s1637_s30 + $0x30] sm:$0xff] %v886_v5  ;;  %vm820_vm10 = vcmp.gt.f32.partialorder %v788_v1, 0.0  ;;  %v852_v9 = vmul.f32 0.1, %v788_v1  ;;  %vm836_vm11 = vcmp.gt.f32.partialorder %v804_v2, 0.0  ;;  %v570_v11 = vpop.f32.mrf.mxu0  ;;  %v634_v12 = vpop.f32.mrf.mxu1 }
 0x12e   : > { %934 = vst [vmem:[%s1637_s30 + $0xb0] sm:$0xff] %v902_v6  ;;  %v868_v10 = vmul.f32 0.1, %v804_v2  ;;  %vm823_vm12 = vcmp.gt.f32.partialorder %v791_v7, 0.0  ;;  %v855_v13 = vmul.f32 0.1, %v791_v7  ;;  %v789_v17 = vadd.f32 %v1628_v24, %v570_v11 }
 0x12f   : > { %vm839_vm13 = vcmp.gt.f32.partialorder %v807_v8, 0.0  ;;  %v871_v14 = vmul.f32 0.1, %v807_v8  ;;  %v884_v15 = vsel %vm820_vm10, %v788_v1, %v852_v9  ;;  %v805_v18 = vadd.f32 %v1628_v24, %v634_v12  ;;  %v1168_v19 = vpop.f32.mrf.mxu0  ;;  %v1184_v20 = vpop.f32.mrf.mxu1 }
 0x130   : > { %v900_v16 = vsel %vm836_vm11, %v804_v2, %v868_v10  ;;  %916 = vst [vmem:[%s1637_s30 + $0x20] sm:$0xff] %v884_v15  ;;  %v887_v21 = vsel %vm823_vm12, %v791_v7, %v855_v13  ;;  %v794_v23 = vadd.f32 %v1168_v19, %v1628_v24  ;;  %v810_v25 = vadd.f32 %v1184_v20, %v1628_v24 }
 0x131   : > { %932 = vst [vmem:[%s1637_s30 + $0xa0] sm:$0xff] %v900_v16  ;;  %v903_v22 = vsel %vm839_vm13, %v807_v8, %v871_v14  ;;  %919 = vst [vmem:[%s1637_s30 + $0x38] sm:$0xff] %v887_v21  ;;  %vm821_vm14 = vcmp.gt.f32.partialorder %v789_v17, 0.0  ;;  %v853_v26 = vmul.f32 0.1, %v789_v17  ;;  %vm837_vm15 = vcmp.gt.f32.partialorder %v805_v18, 0.0  ;;  %v583_v28 = vpop.f32.mrf.mxu0  ;;  %v647_v29 = vpop.f32.mrf.mxu1 }
 0x132   : > { %935 = vst [vmem:[%s1637_s30 + $0xb8] sm:$0xff] %v903_v22  ;;  %v869_v27 = vmul.f32 0.1, %v805_v18  ;;  %vm826_vm0 = vcmp.gt.f32.partialorder %v794_v23, 0.0  ;;  %v858_v30 = vmul.f32 0.1, %v794_v23  ;;  %v792_v34 = vadd.f32 %v1628_v24, %v583_v28 }
 0x133   : > { %vm842_vm1 = vcmp.gt.f32.partialorder %v810_v25, 0.0  ;;  %v874_v31 = vmul.f32 0.1, %v810_v25  ;;  %v885_v32 = vsel %vm821_vm14, %v789_v17, %v853_v26  ;;  %v808_v35 = vadd.f32 %v1628_v24, %v647_v29  ;;  %v1169_v36 = vpop.f32.mrf.mxu0  ;;  %v1185_v37 = vpop.f32.mrf.mxu1 }
 0x134   : > { %v901_v33 = vsel %vm837_vm15, %v805_v18, %v869_v27  ;;  %917 = vst [vmem:[%s1637_s30 + $0x28] sm:$0xff] %v885_v32  ;;  %v890_v38 = vsel %vm826_vm0, %v794_v23, %v858_v30  ;;  %v795_v40 = vadd.f32 %v1169_v36, %v1628_v24  ;;  %v811_v41 = vadd.f32 %v1185_v37, %v1628_v24 }
 0x135   : > { %933 = vst [vmem:[%s1637_s30 + $0xa8] sm:$0xff] %v901_v33  ;;  %v906_v39 = vsel %vm842_vm1, %v810_v25, %v874_v31  ;;  %922 = vst [vmem:[%s1637_s30 + $0x50] sm:$0xff] %v890_v38  ;;  %vm824_vm2 = vcmp.gt.f32.partialorder %v792_v34, 0.0  ;;  %v856_v42 = vmul.f32 0.1, %v792_v34  ;;  %vm840_vm3 = vcmp.gt.f32.partialorder %v808_v35, 0.0  ;;  %v586_v44 = vpop.f32.mrf.mxu0  ;;  %v650_v45 = vpop.f32.mrf.mxu1 }
 0x136   : > { %938 = vst [vmem:[%s1637_s30 + $0xd0] sm:$0xff] %v906_v39  ;;  %v872_v43 = vmul.f32 0.1, %v808_v35  ;;  %vm827_vm4 = vcmp.gt.f32.partialorder %v795_v40, 0.0  ;;  %v859_v46 = vmul.f32 0.1, %v795_v40  ;;  %v793_v50 = vadd.f32 %v1628_v24, %v586_v44 }
 0x137   : > { %vm843_vm5 = vcmp.gt.f32.partialorder %v811_v41, 0.0  ;;  %v875_v47 = vmul.f32 0.1, %v811_v41  ;;  %v888_v48 = vsel %vm824_vm2, %v792_v34, %v856_v42  ;;  %v809_v51 = vadd.f32 %v1628_v24, %v650_v45  ;;  %v1172_v52 = vpop.f32.mrf.mxu0  ;;  %v1188_v53 = vpop.f32.mrf.mxu1 }
 0x138   : > { %v904_v49 = vsel %vm840_vm3, %v808_v35, %v872_v43  ;;  %920 = vst [vmem:[%s1637_s30 + $0x40] sm:$0xff] %v888_v48  ;;  %v891_v54 = vsel %vm827_vm4, %v795_v40, %v859_v46  ;;  %v798_v56 = vadd.f32 %v1172_v52, %v1628_v24  ;;  %v814_v57 = vadd.f32 %v1188_v53, %v1628_v24 }
 0x139   : > { %936 = vst [vmem:[%s1637_s30 + $0xc0] sm:$0xff] %v904_v49  ;;  %v907_v55 = vsel %vm843_vm5, %v811_v41, %v875_v47  ;;  %923 = vst [vmem:[%s1637_s30 + $0x58] sm:$0xff] %v891_v54  ;;  %vm825_vm6 = vcmp.gt.f32.partialorder %v793_v50, 0.0  ;;  %v857_v58 = vmul.f32 0.1, %v793_v50  ;;  %vm841_vm7 = vcmp.gt.f32.partialorder %v809_v51, 0.0  ;;  %v599_v60 = vpop.f32.mrf.mxu0  ;;  %v663_v61 = vpop.f32.mrf.mxu1 }
 0x13a   : > { %939 = vst [vmem:[%s1637_s30 + $0xd8] sm:$0xff] %v907_v55  ;;  %v873_v59 = vmul.f32 0.1, %v809_v51  ;;  %vm830_vm8 = vcmp.gt.f32.partialorder %v798_v56, 0.0  ;;  %v862_v62 = vmul.f32 0.1, %v798_v56  ;;  %v796_v2 = vadd.f32 %v1628_v24, %v599_v60 }
 0x13b   : > { %vm846_vm9 = vcmp.gt.f32.partialorder %v814_v57, 0.0  ;;  %v878_v63 = vmul.f32 0.1, %v814_v57  ;;  %v889_v0 = vsel %vm825_vm6, %v793_v50, %v857_v58  ;;  %v812_v3 = vadd.f32 %v1628_v24, %v663_v61  ;;  %v1173_v4 = vpop.f32.mrf.mxu0  ;;  %v1189_v5 = vpop.f32.mrf.mxu1 }
 0x13c   : > { %v905_v1 = vsel %vm841_vm7, %v809_v51, %v873_v59  ;;  %921 = vst [vmem:[%s1637_s30 + $0x48] sm:$0xff] %v889_v0  ;;  %v894_v6 = vsel %vm830_vm8, %v798_v56, %v862_v62  ;;  %v799_v8 = vadd.f32 %v1173_v4, %v1628_v24  ;;  %v815_v9 = vadd.f32 %v1189_v5, %v1628_v24 }
 0x13d   : > { %937 = vst [vmem:[%s1637_s30 + $0xc8] sm:$0xff] %v905_v1  ;;  %v910_v7 = vsel %vm846_vm9, %v814_v57, %v878_v63  ;;  %926 = vst [vmem:[%s1637_s30 + $0x70] sm:$0xff] %v894_v6  ;;  %vm828_vm10 = vcmp.gt.f32.partialorder %v796_v2, 0.0  ;;  %v860_v10 = vmul.f32 0.1, %v796_v2  ;;  %vm844_vm11 = vcmp.gt.f32.partialorder %v812_v3, 0.0  ;;  %v602_v12 = vpop.f32.mrf.mxu0  ;;  %v666_v13 = vpop.f32.mrf.mxu1 }
 0x13e   : > { %942 = vst [vmem:[%s1637_s30 + $0xf0] sm:$0xff] %v910_v7  ;;  %v876_v11 = vmul.f32 0.1, %v812_v3  ;;  %vm831_vm12 = vcmp.gt.f32.partialorder %v799_v8, 0.0  ;;  %v863_v14 = vmul.f32 0.1, %v799_v8  ;;  %v797_v18 = vadd.f32 %v1628_v24, %v602_v12 }
 0x13f   : > { %vm847_vm13 = vcmp.gt.f32.partialorder %v815_v9, 0.0  ;;  %v879_v15 = vmul.f32 0.1, %v815_v9  ;;  %v892_v16 = vsel %vm828_vm10, %v796_v2, %v860_v10  ;;  %v813_v19 = vadd.f32 %v1628_v24, %v666_v13 }
 0x140   : > { %v908_v17 = vsel %vm844_vm11, %v812_v3, %v876_v11  ;;  %924 = vst [vmem:[%s1637_s30 + $0x60] sm:$0xff] %v892_v16  ;;  %v895_v20 = vsel %vm831_vm12, %v799_v8, %v863_v14  ;;  %vm829_vm14 = vcmp.gt.f32.partialorder %v797_v18, 0.0  ;;  %v861_v22 = vmul.f32 0.1, %v797_v18 }
 0x141   : > { %940 = vst [vmem:[%s1637_s30 + $0xe0] sm:$0xff] %v908_v17  ;;  %v911_v21 = vsel %vm847_vm13, %v815_v9, %v879_v15  ;;  %927 = vst [vmem:[%s1637_s30 + $0x78] sm:$0xff] %v895_v20  ;;  %vm845_vm15 = vcmp.gt.f32.partialorder %v813_v19, 0.0  ;;  %v877_v23 = vmul.f32 0.1, %v813_v19 }
 0x142   : > { %943 = vst [vmem:[%s1637_s30 + $0xf8] sm:$0xff] %v911_v21  ;;  %v893_v24 = vsel %vm829_vm14, %v797_v18, %v861_v22 }
 0x143   : > { %v909_v25 = vsel %vm845_vm15, %v813_v19, %v877_v23  ;;  %925 = vst [vmem:[%s1637_s30 + $0x68] sm:$0xff] %v893_v24 }
 0x144   : > { %941 = vst [vmem:[%s1637_s30 + $0xe8] sm:$0xff] %v909_v25 }
 0x145   : > { %1374 = shalt.err (!%p1371_p5)
}
 0x146   : > { %s1375_s4 = scalar_lea.hbm %s1700_s21, 4096  ;;  %s1379_s20 = scalar_lea.hbm %s1755_s3, 8192 }
 0x147   : > { %p1376_p7 = scmp.ne.s32.totalorder %s1700_s21, %s1375_s4  ;;  %p1380_p9 = scmp.lt.s32.totalorder %s1700_s21, %s1755_s3 }
 0x148   : > { %p1381_p11 = scmp.lt.s32.totalorder %s1379_s20, %s1375_s4 }
 0x149   : > { %p1377_p4 = pnand %p1376_p7, %p1564_p13 }
 0x14a   : > { %p1382_p10 = por %p1381_p11, %p1380_p9 }
 0x14b   : > { %p1378_p6 = pneg %p1377_p4 }
 0x14d   : > { %p1383_p1 = pnand %p1382_p10, %p1378_p6 }
 0x14f   : > { %1386 = shalt.err (!%p1383_p1)
}
 0x150   : > { %s1452_s30 = smov 128   ;;  %s1453_s29 = smov 8  }
 0x151   : > { %1212 = dma.vmem_to_hbm [thread:$0]  (%p1564_p13), %s1702_s5, 4096, %s1700_s21, %s945_s10, %s1452_s30, %s1452_s30, %s1453_s29  }
 0x152 PF: > { %s974_s15 = sand.u32 1, %s1425_s12   ;;  %p1771_p8 = scmp.ne.s32.totalorder %s1762_s23, 0 }
 0x153   : > { %p1772_p12 = scmp.ge.s32.totalorder %s1445_s17, 2  ;;  %s975_s6 = scalar_lea.sflag [#allocation5], %s974_s15 }
 0x155   : > { %p1223_p0 = pnand %p1772_p12, %p1771_p8 }
 0x157   : > { %p1224_p2 = pneg %p1223_p0 }
 0x159   : > { %1420 = dma.done.wait (%p1224_p2), %s975_s6, 4096  }
 0x15a   : > { %1422 = vsyncadd (%p1224_p2), %s975_s6, 4294963200  ;;  %s20_s17 = sadd.s32 1, %s1445_s17   ;;  %s1773_s12 = smov %s1429_s13 }
 0x15b   : > { %p17_p3 = scmp.ge.s32.totalorder %s20_s17, 4   ;;  %s1774_s13 = smov %s1433_s14 }
 0x15c   : > { %s1775_s14 = smov %s1573_s19  ;;  %s1776_s15 = smov %s1441_s16 }
 0x15d   : > { %s1777_s16 = smov %s1779_s28  ;;  %19 = sbr.rel (!%p17_p3) target bundleno = 7 (0x7), region = 93 }
 0x162   :  { %980 = vsyncpa [#allocation4], 1 }
 0x163   :  { %982 = vsyncpa [#allocation4 + $0x1], 1 }
 0x164   :  { %983 = vsyncpa [#allocation7], 1 }
 0x165   :  { %984 = vsyncpa [#allocation5], 1 }
 0x166   :  { %986 = vsyncpa [#allocation5 + $0x1], 1 }

</bundles_post_ra>
